<compile_context>
chip_gen: v5e
topology: v5e:2x2
jax: 0.10.0
libtpu: 0.0.40
codegen_flags: <defaults>
</compile_context>

<pallas_src>
import functools
from typing import NamedTuple

import jax
import jax.numpy as jnp
from jax.experimental import pallas as pl
from jax.experimental.pallas import tpu as pltpu

LANE = 128          # vreg lane width (last-dim granularity)
BF16_SUBLANE = 16   # bf16 packs 16 rows per vreg -> batch-tile granularity


def _round_up(n, m):
    return ((n + m - 1) // m) * m


class ChatbotParams(NamedTuple):
    w1p: jax.Array   # (D_in_p, H_p)    compute dtype (bf16)
    b1p: jax.Array   # (1, H_p)         f32
    w2p: jax.Array   # (H_p, D_out_p)   compute dtype (bf16)
    b2p: jax.Array   # (1, D_out_p)     f32


def prepare_params(w1, b1, w2, b2, compute_dtype=jnp.bfloat16):
    """Pad to lane-dense shapes and cast weights ONCE (not per forward call)."""
    D_in, H = w1.shape
    H2, D_out = w2.shape
    assert H == H2, "fc1 out_features must equal fc2 in_features"
    b1 = jnp.reshape(b1, (1, H)).astype(jnp.float32)
    b2 = jnp.reshape(b2, (1, D_out)).astype(jnp.float32)

    D_in_p = _round_up(D_in, LANE)
    H_p = _round_up(H, LANE)
    D_out_p = _round_up(D_out, LANE)

    # Zero padding is inert through matmul, zero-padded bias add and ReLU.
    w1p = jnp.zeros((D_in_p, H_p), compute_dtype).at[:D_in, :H].set(
        w1.astype(compute_dtype))
    w2p = jnp.zeros((H_p, D_out_p), compute_dtype).at[:H, :D_out].set(
        w2.astype(compute_dtype))
    b1p = jnp.zeros((1, H_p), jnp.float32).at[:, :H].set(b1)
    b2p = jnp.zeros((1, D_out_p), jnp.float32).at[:, :D_out].set(b2)
    return ChatbotParams(w1p, b1p, w2p, b2p)


def mlp_kernel(x_ref, w1_ref, b1_ref, w2_ref, b2_ref, o_ref, acc_ref):
    """One (batch-tile, hidden-tile) grid step of fc1 -> ReLU -> fc2."""
    k = pl.program_id(1)                      # hidden (contraction) tile index

    @pl.when(k == 0)
    def _():
        acc_ref[...] = jnp.zeros_like(acc_ref)

    # fc1 partial: full D_in contraction for one H-tile (MXU, f32 accumulate).
    x = x_ref[...].astype(w1_ref.dtype)
    h = jnp.dot(x, w1_ref[...], preferred_element_type=jnp.float32)
    h = jnp.maximum(h + b1_ref[...], 0.0)     # bias + ReLU on the VPU

    # fc2 partial: accumulate this H-tile's contribution into f32 scratch.
    acc_ref[...] += jnp.dot(h.astype(w2_ref.dtype), w2_ref[...],
                            preferred_element_type=jnp.float32)

    @pl.when(k == pl.num_programs(1) - 1)
    def _():
        o_ref[...] = (acc_ref[...] + b2_ref[...]).astype(o_ref.dtype)


@functools.partial(
    jax.jit,
    static_argnames=("out_features", "block_b", "block_h", "out_dtype"))
def chatbot_forward(x, params, *, out_features, block_b=256, block_h=512,
                    out_dtype=None):
    w1p, b1p, w2p, b2p = params
    B, D_in = x.shape
    D_in_p, H_p = w1p.shape
    D_out_p = w2p.shape[1]
    D_out = out_features
    if out_dtype is None:
        out_dtype = x.dtype          # match caller (f32 == PyTorch semantics)

    # Batch tile: multiple of 16 (bf16 sublane packing), capped at block_b.
    tb = min(block_b, _round_up(B, BF16_SUBLANE))
    tb = max(BF16_SUBLANE, (tb // BF16_SUBLANE) * BF16_SUBLANE)
    B_p = _round_up(B, tb)

    # Hidden tile: largest multiple of 128 <= block_h dividing H_p (no ragged
    # edge on the reduction axis).
    th = max(LANE, (min(block_h, H_p) // LANE) * LANE)
    while H_p % th:
        th -= LANE

    # Pad/cast x only if actually required; otherwise stream x as-is and cast
    # per-tile in the kernel (avoids a full HBM round trip).
    if (D_in != D_in_p) or (B != B_p):
        xp = jnp.zeros((B_p, D_in_p), w1p.dtype).at[:B, :D_in].set(
            x.astype(w1p.dtype))
    else:
        xp = x

    grid = (B_p // tb, H_p // th)

    def isz(d):
        return jnp.dtype(d).itemsize

    # VMEM budget: 2x (double-buffered) per input/output block + f32 scratch,
    # with 2x headroom. Note: weight/bias/x blocks have constant block indices
    # along the axes they don't vary on, so Pallas skips the redundant copies.
    est = 2 * (tb * D_in_p * isz(xp.dtype)
               + D_in_p * th * isz(w1p.dtype)
               + 8 * th * 4
               + th * D_out_p * isz(w2p.dtype)
               + 8 * D_out_p * 4
               + tb * D_out_p * isz(out_dtype))
    est += tb * D_out_p * 4
    vmem_limit = int(min(max(2 * est, 32 * 1024 * 1024), 64 * 1024 * 1024))

    flops = 2 * B_p * (D_in_p * H_p + H_p * D_out_p)
    bytes_accessed = (B_p * D_in_p * isz(xp.dtype)
                      + (B_p // tb) * (D_in_p * H_p * isz(w1p.dtype)
                                       + H_p * D_out_p * isz(w2p.dtype))
                      + B_p * D_out_p * isz(out_dtype))

    out_p = pl.pallas_call(
        mlp_kernel,
        out_shape=jax.ShapeDtypeStruct((B_p, D_out_p), out_dtype),
        grid=grid,
        in_specs=[
            # Activations: one batch tile per i step, constant over k.
            pl.BlockSpec((tb, D_in_p), lambda i, k: (i, 0)),
            # fc1 weight / bias: one hidden (N) tile per k step.
            pl.BlockSpec((D_in_p, th), lambda i, k: (0, k)),
            pl.BlockSpec((1, th), lambda i, k: (0, k)),
            # fc2 weight: one hidden (K) tile per k step; bias resident.
            pl.BlockSpec((th, D_out_p), lambda i, k: (k, 0)),
            pl.BlockSpec((1, D_out_p), lambda i, k: (0, 0)),
        ],
        out_specs=pl.BlockSpec((tb, D_out_p), lambda i, k: (i, 0)),
        scratch_shapes=[pltpu.VMEM((tb, D_out_p), jnp.float32)],
        compiler_params=pltpu.CompilerParams(
            dimension_semantics=("parallel", "arbitrary"),
            vmem_limit_bytes=vmem_limit),
        cost_estimate=pl.CostEstimate(flops=flops, transcendentals=0,
                                      bytes_accessed=bytes_accessed),
    )(xp, w1p, b1p, w2p, b2p)

    if (B != B_p) or (D_out != D_out_p):
        return out_p[:B, :D_out]
    return out_p


def init_params(key, input_size, hidden_size, output_size):
    # Deterministic init mimicking torch.nn.Linear's U(-1/sqrt(fan_in), ...).
    k1, k2, k3, k4 = jax.random.split(key, 4)
    s1 = 1.0 / jnp.sqrt(input_size)
    s2 = 1.0 / jnp.sqrt(hidden_size)
    w1 = jax.random.uniform(k1, (input_size, hidden_size), jnp.float32, -s1, s1)
    b1 = jax.random.uniform(k2, (hidden_size,), jnp.float32, -s1, s1)
    w2 = jax.random.uniform(k3, (hidden_size, output_size), jnp.float32, -s2, s2)
    b2 = jax.random.uniform(k4, (output_size,), jnp.float32, -s2, s2)
    return w1, b1, w2, b2


if __name__ == "__main__":
    # Small shapes consistent with the module: x is (batch, input_size).
    batch, input_size, hidden_size, output_size = 8, 32, 64, 16

    key = jax.random.PRNGKey(0)
    kx, kp = jax.random.split(key)
    x = jax.random.normal(kx, (batch, input_size), jnp.float32)
    w1, b1, w2, b2 = init_params(kp, input_size, hidden_size, output_size)

    # Pad/cast weights once (hoisted out of the forward path).
    params = prepare_params(w1, b1, w2, b2)

    out = chatbot_forward(x, params, out_features=output_size)
    jax.block_until_ready(out)

    # Reference with the same bf16 operand rounding + f32 accumulation.
    bf = jnp.bfloat16
    xr = x.astype(bf).astype(jnp.float32)
    w1r = w1.astype(bf).astype(jnp.float32)
    w2r = w2.astype(bf).astype(jnp.float32)
    h_ref = jnp.maximum(xr @ w1r + b1[None, :], 0.0)
    ref = h_ref.astype(bf).astype(jnp.float32) @ w2r + b2[None, :]

    assert out.shape == (batch, output_size)
    assert jnp.allclose(out, ref, atol=5e-3, rtol=5e-3), float(
        jnp.max(jnp.abs(out - ref)))

    print("KERNEL_OK")
</pallas_src>

<mosaic_0001>
module attributes {stable_mosaic.version = 11 : i64} {
  func.func @mlp_kernel(%arg0: i32, %arg1: i32, %arg2: memref<16x128xbf16, #tpu.memory_space<vmem>>, %arg3: memref<128x128xbf16, #tpu.memory_space<vmem>>, %arg4: memref<1x128xf32, #tpu.memory_space<vmem>>, %arg5: memref<128x128xbf16, #tpu.memory_space<vmem>>, %arg6: memref<1x128xf32, #tpu.memory_space<vmem>>, %arg7: memref<16x128xf32, #tpu.memory_space<vmem>>, %arg8: memref<16x128xf32, #tpu.memory_space<vmem>>) attributes {dimension_semantics = [#tpu.dimension_semantics<parallel>, #tpu.dimension_semantics<arbitrary>], iteration_bounds = array<i64: 1, 1>, scalar_prefetch = 0 : i64, scratch_operands = 1 : i64, tpu.core_type = #tpu.core_type<tc>, window_params = [{transform_indices = @transform_0, window_bounds = array<i64: 16, 128>}, {transform_indices = @transform_1, window_bounds = array<i64: 128, 128>}, {transform_indices = @transform_2, window_bounds = array<i64: 1, 128>}, {transform_indices = @transform_3, window_bounds = array<i64: 128, 128>}, {pipeline_mode = #tpu.pipeline_mode<synchronous>, transform_indices = @transform_4, window_bounds = array<i64: 1, 128>}, {transform_indices = @transform_5, window_bounds = array<i64: 16, 128>}]} {
    %c0_i32 = arith.constant 0 : i32
    %0 = arith.cmpi eq, %arg1, %c0_i32 : i32
    %1 = arith.extui %0 : i1 to i32
    %c0_i32_0 = arith.constant 0 : i32
    %2 = arith.cmpi ne, %1, %c0_i32_0 : i32
    scf.if %2 {
      %cst_16 = arith.constant 0.000000e+00 : f32
      %20 = vector.broadcast %cst_16 : f32 to vector<16x128xf32>
      %c0_17 = arith.constant 0 : index
      %c0_18 = arith.constant 0 : index
      %21 = vector.load %arg8[%c0_17, %c0_18] : memref<16x128xf32, #tpu.memory_space<vmem>>, vector<16x128xf32>
      tpu.vector_store %arg8[%c0_17, %c0_18], %20 {strides = array<i32>} : memref<16x128xf32, #tpu.memory_space<vmem>>, vector<16x128xf32>,
    } else {
    }
    %c0 = arith.constant 0 : index
    %c0_1 = arith.constant 0 : index
    %3 = vector.load %arg2[%c0, %c0_1] : memref<16x128xbf16, #tpu.memory_space<vmem>>, vector<16x128xbf16>
    %c0_2 = arith.constant 0 : index
    %c0_3 = arith.constant 0 : index
    %4 = vector.load %arg3[%c0_2, %c0_3] : memref<128x128xbf16, #tpu.memory_space<vmem>>, vector<128x128xbf16>
    %cst = arith.constant dense<0.000000e+00> : vector<16x128xf32>
    %5 = tpu.matmul %3, %4, %cst {dimension_numbers = #tpu.dot_dimension_numbers<[1], [0], [0], [1], [0, 0, 1, 1], [], []>} : vector<16x128xbf16>, vector<128x128xbf16>, vector<16x128xf32> -> vector<16x128xf32>
    %c0_4 = arith.constant 0 : index
    %c0_5 = arith.constant 0 : index
    %6 = vector.load %arg4[%c0_4, %c0_5] : memref<1x128xf32, #tpu.memory_space<vmem>>, vector<1x128xf32>
    %7 = vector.broadcast %6 : vector<1x128xf32> to vector<16x128xf32>
    %8 = arith.addf %5, %7 : vector<16x128xf32>
    %cst_6 = arith.constant 0.000000e+00 : f32
    %9 = vector.broadcast %cst_6 : f32 to vector<16x128xf32>
    %10 = arith.maximumf %8, %9 : vector<16x128xf32>
    %c0_7 = arith.constant 0 : index
    %c0_8 = arith.constant 0 : index
    %11 = vector.load %arg8[%c0_7, %c0_8] : memref<16x128xf32, #tpu.memory_space<vmem>>, vector<16x128xf32>
    %12 = arith.truncf %10 : vector<16x128xf32> to vector<16x128xbf16>
    %c0_9 = arith.constant 0 : index
    %c0_10 = arith.constant 0 : index
    %13 = vector.load %arg5[%c0_9, %c0_10] : memref<128x128xbf16, #tpu.memory_space<vmem>>, vector<128x128xbf16>
    %cst_11 = arith.constant dense<0.000000e+00> : vector<16x128xf32>
    %14 = tpu.matmul %12, %13, %cst_11 {dimension_numbers = #tpu.dot_dimension_numbers<[1], [0], [0], [1], [0, 0, 1, 1], [], []>} : vector<16x128xbf16>, vector<128x128xbf16>, vector<16x128xf32> -> vector<16x128xf32>
    %15 = arith.addf %11, %14 : vector<16x128xf32>
    %c0_12 = arith.constant 0 : index
    %c0_13 = arith.constant 0 : index
    %16 = vector.load %arg8[%c0_12, %c0_13] : memref<16x128xf32, #tpu.memory_space<vmem>>, vector<16x128xf32>
    tpu.vector_store %arg8[%c0_12, %c0_13], %15 {strides = array<i32>} : memref<16x128xf32, #tpu.memory_space<vmem>>, vector<16x128xf32>,
    %c0_i32_14 = arith.constant 0 : i32
    %17 = arith.cmpi eq, %arg1, %c0_i32_14 : i32
    %18 = arith.extui %17 : i1 to i32
    %c0_i32_15 = arith.constant 0 : i32
    %19 = arith.cmpi ne, %18, %c0_i32_15 : i32
    scf.if %19 {
      %c0_16 = arith.constant 0 : index
      %c0_17 = arith.constant 0 : index
      %20 = vector.load %arg8[%c0_16, %c0_17] : memref<16x128xf32, #tpu.memory_space<vmem>>, vector<16x128xf32>
      %c0_18 = arith.constant 0 : index
      %c0_19 = arith.constant 0 : index
      %21 = vector.load %arg6[%c0_18, %c0_19] : memref<1x128xf32, #tpu.memory_space<vmem>>, vector<1x128xf32>
      %22 = vector.broadcast %21 : vector<1x128xf32> to vector<16x128xf32>
      %23 = arith.addf %20, %22 : vector<16x128xf32>
      %c0_20 = arith.constant 0 : index
      %c0_21 = arith.constant 0 : index
      %24 = vector.load %arg7[%c0_20, %c0_21] : memref<16x128xf32, #tpu.memory_space<vmem>>, vector<16x128xf32>
      tpu.vector_store %arg7[%c0_20, %c0_21], %23 {strides = array<i32>} : memref<16x128xf32, #tpu.memory_space<vmem>>, vector<16x128xf32>,
    } else {
    }
    return
  }
  func.func @transform_0(%arg0: i32, %arg1: i32) -> (i32, i32) {
    %c0_i32 = arith.constant 0 : i32
    %c0_i32_0 = arith.constant 0 : i32
    return %arg0, %c0_i32 : i32, i32
  }
  func.func @transform_1(%arg0: i32, %arg1: i32) -> (i32, i32) {
    %c0_i32 = arith.constant 0 : i32
    %c0_i32_0 = arith.constant 0 : i32
    return %c0_i32, %arg1 : i32, i32
  }
  func.func @transform_2(%arg0: i32, %arg1: i32) -> (i32, i32) {
    %c0_i32 = arith.constant 0 : i32
    %c0_i32_0 = arith.constant 0 : i32
    return %c0_i32, %arg1 : i32, i32
  }
  func.func @transform_3(%arg0: i32, %arg1: i32) -> (i32, i32) {
    %c0_i32 = arith.constant 0 : i32
    %c0_i32_0 = arith.constant 0 : i32
    return %arg1, %c0_i32 : i32, i32
  }
  func.func @transform_4(%arg0: i32, %arg1: i32) -> (i32, i32) {
    %c0_i32 = arith.constant 0 : i32
    %c0_i32_0 = arith.constant 0 : i32
    %c0_i32_1 = arith.constant 0 : i32
    return %c0_i32, %c0_i32_0 : i32, i32
  }
  func.func @transform_5(%arg0: i32, %arg1: i32) -> (i32, i32) {
    %c0_i32 = arith.constant 0 : i32
    %c0_i32_0 = arith.constant 0 : i32
    return %arg0, %c0_i32 : i32, i32
  }
}

</mosaic_0001>

<bundles_post_ra>
// kernel: chatbot_forward.1
= control target key start
LH: loop header
LB: loop body
LE: loop exit
PB: predicated region body
PF: predicated region fallthrough
CT: control target
= control target key end

     0   :  { %10 = vsyncpa [#allocation4], 0  ;;  %s452_s0 = inlined_call_operand.vmem [shape: bf16[16,128], index: 0, kind: input, shape index: {}]   ;;  %s453_s1 = inlined_call_operand.hbm [shape: bf16[128,128], index: 1, kind: input, shape index: {}]   ;;  %s454_s2 = inlined_call_operand.vmem [shape: f32[1,128], index: 2, kind: input, shape index: {}]   ;;  %s455_s3 = inlined_call_operand.hbm [shape: bf16[128,128], index: 3, kind: input, shape index: {}]   ;;  %s456_s4 = inlined_call_operand.vmem [shape: f32[1,128], index: 4, kind: input, shape index: {}]   ;;  %s457_s5 = inlined_call_operand.vmem [shape: f32[16,128], index: 5, kind: output, shape index: {}]  }
   0x1   :  { %s18_s20 = sshll.u32 %s453_s1, 4  ;;  %s19_s20 = int_to_ptr.hbm [resolvable:$true] %s18_s20 }
   0x2   :  { %11 = vsyncpa [#allocation6], 0  ;;  %s397_s21 = smov [#allocation3]   ;;  %s33_s25 = sshll.u32 %s455_s3, 4  ;;  %s34_s25 = int_to_ptr.hbm [resolvable:$true] %s33_s25 }
   0x3   :  { %s20_s22 = sshll.u32 %s397_s21, 4  ;;  %s398_s26 = smov 64   ;;  %s21_s22 = int_to_ptr.vmem [resolvable:$true] %s20_s22 }
   0x4   :  { %s399_s27 = smov 4   ;;  %s400_s28 = smov [#allocation5]  }
   0x5   :  { %26 = dma.hbm_to_vmem [thread:$0]  %s19_s20, 1024, %s21_s22, [#allocation4], %s398_s26, %s398_s26, %s399_s27  }
   0x6   :  { %s35_s29 = sshll.u32 %s400_s28, 4  ;;  %s36_s29 = int_to_ptr.vmem [resolvable:$true] %s35_s29 }
   0x7   :  { %41 = dma.hbm_to_vmem [thread:$0]  %s34_s25, 1024, %s36_s29, [#allocation6], %s398_s26, %s398_s26, %s399_s27  }
   0x8   :  { %393 = dma.done.wait [#allocation4], 1024  }
   0x9   :  { %394 = vsyncadd [#allocation4], 4294966272 }
   0xa   :  { %395 = dma.done.wait [#allocation6], 1024  }
   0xb   :  { %396 = vsyncadd [#allocation6], 4294966272  ;;  %v330_v0 = vld [vmem:[#allocation3 + $0x38] sm:$0xff]  ;;  %v329_v1 = vld [vmem:[#allocation3 + $0x30] sm:$0xff] }
   0xc   :  { %134 = vmatpush.bf16.msra.mxu0 %v330_v0  ;;  %v338_v2 = vld [vmem:[#allocation5 + $0x38] sm:$0xff]  ;;  %v337_v3 = vld [vmem:[#allocation5 + $0x30] sm:$0xff]  ;;  %v328_v4 = vld [vmem:[#allocation3 + $0x28] sm:$0xff] }
   0xd   :  { %217 = vmatpush.bf16.msra.mxu1 %v338_v2  ;;  %v336_v5 = vld [vmem:[#allocation5 + $0x28] sm:$0xff]  ;;  %v327_v6 = vld [vmem:[#allocation3 + $0x20] sm:$0xff]  ;;  %v326_v8 = vld [vmem:[#allocation3 + $0x18] sm:$0xff] }
   0xe   :  { %v335_v7 = vld [vmem:[#allocation5 + $0x20] sm:$0xff]  ;;  %v325_v9 = vld [vmem:[#allocation3 + $0x10] sm:$0xff]  ;;  %v324_v10 = vld [vmem:[#allocation3 + $0x8] sm:$0xff] }
   0xf   :  { %v323_v11 = vld [vmem:[#allocation3] sm:$0xff]  ;;  %v334_v13 = vld [vmem:[#allocation5 + $0x18] sm:$0xff]  ;;  %v333_v14 = vld [vmem:[#allocation5 + $0x10] sm:$0xff] }
  0x10   :  { %135 = vmatpush.bf16.msra.mxu0 %v329_v1  ;;  %v322_v12 = vld [vmem:[%s452_s0] sm:$0xff]  ;;  %v332_v15 = vld [vmem:[#allocation5 + $0x8] sm:$0xff] }
  0x11   :  { %218 = vmatpush.bf16.msra.mxu1 %v337_v3  ;;  %v331_v16 = vld [vmem:[#allocation5] sm:$0xff] }
  0x12   :  { %v343_v18 = vld [vmem:[%s454_s2] ss:$0 sm:$0xff] }
  0x13   :  { %v344_v25 = vld [vmem:[%s456_s4] ss:$0 sm:$0xff] }
  0x14   :  { %136 = vmatpush.bf16.msra.mxu0 %v328_v4 }
  0x15   :  { %219 = vmatpush.bf16.msra.mxu1 %v336_v5 }
  0x18   :  { %137 = vmatpush.bf16.msra.mxu0 %v327_v6 }
  0x19   :  { %220 = vmatpush.bf16.msra.mxu1 %v335_v7 }
  0x1c   :  { %138 = vmatpush.bf16.msra.mxu0 %v326_v8 }
  0x1d   :  { %221 = vmatpush.bf16.msra.mxu1 %v334_v13 }
  0x20   :  { %139 = vmatpush.bf16.msra.mxu0 %v325_v9 }
  0x21   :  { %222 = vmatpush.bf16.msra.mxu1 %v333_v14 }
  0x24   :  { %140 = vmatpush.bf16.msra.mxu0 %v324_v10 }
  0x25   :  { %223 = vmatpush.bf16.msra.mxu1 %v332_v15 }
  0x28   :  { %141 = vmatpush.bf16.msra.mxu0 %v323_v11 }
  0x29   :  { %224 = vmatpush.bf16.msra.mxu1 %v331_v16 }
  0x2b   :  { %142 = vmatmul.bf16.vlgmr.msra.gmra.mxu0 %v322_v12 }
  0xa8   :  { %v143_v17 = vpop.f32.mrf.mxu0 }
  0xa9   :  { %v144_v19 = vadd.f32 %v343_v18, %v143_v17 }
  0xab   :  { %v148_v22 = vmax.f32 %v144_v19, 0.0 }
  0xb0   :  { %v145_v20 = vpop.f32.mrf.mxu0 }
  0xb1   :  { %v146_v21 = vadd.f32 %v343_v18, %v145_v20 }
  0xb3   :  { %v149_v23 = vmax.f32 %v146_v21, 0.0 }
  0xb5   :  { %v152_v24 = vpack.c.bf16 %v149_v23, %v148_v22 }
  0xb7   :  { %225 = vmatmul.bf16.vlgmr.msra.gmra.mxu1 %v152_v24 }
 0x134   :  { %v226_v26 = vpop.f32.mrf.mxu1 }
 0x135   :  { %v244_v27 = vadd.f32 %v344_v25, %v226_v26 }
 0x137   :  { %246 = vst [vmem:[%s457_s5] sm:$0xff] %v244_v27 }
 0x13c   :  { %v228_v28 = vpop.f32.mrf.mxu1 }
 0x13d   :  { %v245_v29 = vadd.f32 %v344_v25, %v228_v28 }
 0x13f   :  { %247 = vst [vmem:[%s457_s5 + $0x8] sm:$0xff] %v245_v29 }
 0x140   :  { %252 = vsyncpa [#allocation4], 1 }
 0x141   :  { %253 = vsyncpa [#allocation6], 1 }

</bundles_post_ra>
